<compile_context>
chip_gen: v7x
topology: tpu7x:2x2x1
jax: 0.10.0
libtpu: 0.0.40
codegen_flags: <defaults>
</compile_context>

<pallas_src>
import jax
import jax.numpy as jnp
from jax import lax
from jax.experimental import pallas as pl
from jax.experimental.pallas import tpu as pltpu

# ----------------------------- config -----------------------------
B = 2           # batch
C = 4           # input channels of input_vol
H = W = 16      # spatial
F = 8           # conv feature maps in SimpleCNN
S = 4           # number of slices (depth of voxelized_mean_mesh)
N_MODES = 8     # PCA modes predicted by mp_model
N_CP = 16       # control points decoded by PCADecoder (each 3D)
HW = H * W
K_CONV = C * 9
K_CP = N_CP * 3
N_AUX = 3 + S + S + 3          # global_shift | x_shifts | y_shifts | rotations = 14
N_COMB = N_AUX + K_CP          # fused head width: aux heads + folded PCA decode = 62
K_REN = K_CP + 2 * S           # fused render-vector width: [wx|wy|wz|y_sh|x_sh] = 56


# ----------------------------- fused Pallas kernel -----------------------------
def _full_pp_kernel(patchesT_ref, conv_wT_ref, pool_ref, comb_w_ref, comb_b_ref,
                    render_ref, mean_ref, o_ref):
    # ---- SimpleCNN: 3x3 conv as feature-major matmul (bias folded) + ReLU ----
    # (F, K_CONV+1) @ (K_CONV+1, B*HW) -> (F, B*HW): ReLU on fully lane-dense vregs.
    yT = jnp.maximum(
        jnp.dot(conv_wT_ref[...], patchesT_ref[...],
                preferred_element_type=jnp.float32), 0.0)               # (F, B*HW)

    # ---- global average pool: NT matmul flips back to batch-major ----
    # (B, B*HW) . (F, B*HW) contracted over the pixel axis -> (B, F)
    pooled = lax.dot_general(pool_ref[...], yT, (((1,), (1,)), ((), ())),
                             preferred_element_type=jnp.float32)        # (B, F)

    # ---- fused heads: [gshift | x_sh | y_sh | rot | PCA-decoded control points] ----
    heads = jnp.dot(pooled, comb_w_ref[...],
                    preferred_element_type=jnp.float32) + comb_b_ref[...]   # (B, N_COMB)
    gshift = heads[:, 0:3]                                              # (B, 3)
    x_sh = heads[:, 3:3 + S]                                            # (B, S)
    y_sh = heads[:, 3 + S:3 + 2 * S]                                    # (B, S)
    rot = heads[:, 3 + 2 * S:3 + 2 * S + 3]                             # (B, 3)
    cp = heads[:, N_AUX:N_AUX + K_CP]        # (B, 48) coordinate-major: [x(16)|y(16)|z(16)]

    # ---- rigid transform R = Rz @ Ry @ Rx applied elementwise (EUP sin/cos + VPU) ----
    ax = rot[:, 0:1]; ay = rot[:, 1:2]; az = rot[:, 2:3]                # (B, 1) each
    cx, sx = jnp.cos(ax), jnp.sin(ax)
    cy, sy = jnp.cos(ay), jnp.sin(ay)
    cz, sz = jnp.cos(az), jnp.sin(az)
    r00 = cz * cy; r01 = cz * sy * sx - sz * cx; r02 = sz * sx + cz * sy * cx
    r10 = sz * cy; r11 = cz * cx + sz * sy * sx; r12 = sz * sy * cx - cz * sx
    r20 = -sy;     r21 = cy * sx;                r22 = cy * cx

    px = cp[:, 0:N_CP]; py = cp[:, N_CP:2 * N_CP]; pz = cp[:, 2 * N_CP:3 * N_CP]
    wx = r00 * px + r01 * py + r02 * pz + gshift[:, 0:1]                # (B, N_CP)
    wy = r10 * px + r11 * py + r12 * pz + gshift[:, 1:2]
    wz = r20 * px + r21 * py + r22 * pz + gshift[:, 2:3]

    # ---- single fused render matmul: per-slice bases + y/x-shift rows pre-packed ----
    vec = jnp.concatenate([wx, wy, wz, y_sh, x_sh], axis=-1)            # (B, K_REN=56)
    o_ref[...] = jnp.dot(vec, render_ref[...],
                         preferred_element_type=jnp.float32) + mean_ref[...]   # (B, S*HW)


# ----------------------------- host-side prep -----------------------------
def im2col_3x3_T(x):
    # x: [B, C, H, W] (NCHW, pad=1) -> [C*9 + 1, B*HW]  (contraction dim FIRST,
    # ones row appended for the folded conv bias; columns are batch-major b*HW+h*W+w).
    xp = jnp.pad(x, ((0, 0), (0, 0), (1, 1), (1, 1)))
    cols = [xp[:, :, dy:dy + H, dx:dx + W] for dy in range(3) for dx in range(3)]
    p = jnp.stack(cols, axis=2)                                # (B, C, 9, H, W)
    p = p.transpose(1, 2, 0, 3, 4).reshape(K_CONV, B * HW)     # (C*9, B*HW)
    ones = jnp.ones((1, B * HW), jnp.float32)
    return jnp.concatenate([p, ones], axis=0)                  # (C*9+1, B*HW)


def init_params(key):
    ks = jax.random.split(key, 6)
    return {
        # SimpleCNN: 3x3 conv (C -> F) + bias, flattened for im2col matmul
        'conv_w': 0.1 * jax.random.normal(ks[0], (K_CONV, F), jnp.float32),
        'conv_b': 0.1 * jax.random.normal(ks[1], (F,), jnp.float32),
        # linear heads: pooled features -> [modes | gshift | x_sh | y_sh | rot]
        'head_w': 0.1 * jax.random.normal(ks[2], (F, N_MODES + N_AUX), jnp.float32),
        'head_b': 0.1 * jax.random.normal(ks[3], (N_MODES + N_AUX,), jnp.float32),
        # PCADecoder: modes -> control points (flattened interleaved [n, xyz])
        'pca_w': 0.1 * jax.random.normal(ks[4], (N_MODES, K_CP), jnp.float32),
        'pca_b': 0.1 * jax.random.normal(ks[5], (K_CP,), jnp.float32),
        # per-slice linear render basis over interleaved [n, xyz] control-point layout
        'render_basis': 0.05 * jax.random.normal(jax.random.PRNGKey(7),
                                                 (S, K_CP, HW), jnp.float32),
    }


def fuse_params(params):
    """One-time (outside jit) algebraic folding + layout prep for the fused kernel."""
    head_w, head_b = params['head_w'], params['head_b']
    pca_w, pca_b = params['pca_w'], params['pca_b']

    # Fold PCADecoder into the mode head: cp = pooled @ (Wm @ pca_w) + (bm @ pca_w + pca_b)
    cp_w = head_w[:, :N_MODES] @ pca_w                     # (F, K_CP), interleaved [n, xyz]
    cp_b = head_b[:N_MODES] @ pca_w + pca_b                # (K_CP,)

    # Permute decoded-cp columns (and render-basis rows) from interleaved [n, xyz] to
    # coordinate-major [xyz, n] so the kernel uses contiguous lane slices.
    cp_w_cm = cp_w.reshape(F, N_CP, 3).transpose(0, 2, 1).reshape(F, K_CP)
    cp_b_cm = cp_b.reshape(N_CP, 3).transpose(1, 0).reshape(K_CP)
    basis_cm = params['render_basis'].reshape(S, N_CP, 3, HW) \
                                     .transpose(0, 2, 1, 3).reshape(S, K_CP, HW)

    comb_w = jnp.concatenate([head_w[:, N_MODES:], cp_w_cm], axis=1)       # (F, N_COMB)
    comb_b = jnp.concatenate([head_b[N_MODES:], cp_b_cm]).reshape(1, N_COMB)

    # Transposed conv weight with bias folded as an extra column (matches ones row).
    conv_wT = jnp.concatenate([params['conv_w'].T,
                               params['conv_b'].reshape(F, 1)], axis=1)    # (F, K_CONV+1)

    # Global-average-pool as a (B, B*HW) block matrix of 1/HW (batch-major columns).
    pool_mat = jnp.kron(jnp.eye(B, dtype=jnp.float32),
                        jnp.ones((1, HW), jnp.float32)) / HW               # (B, B*HW)

    # Single fused render matrix (K_REN, S*HW):
    #   rows 0:48   hstack_s basis_cm[s]                  (applied to [wx|wy|wz])
    #   rows 48:52  block-diag column-sums of y-coord rows (applied to y_sh)
    #   rows 52:56  block-diag column-sums of z-coord rows (applied to x_sh)
    r_main = basis_cm.transpose(1, 0, 2).reshape(K_CP, S * HW)             # (48, S*HW)
    y_sums = basis_cm[:, N_CP:2 * N_CP, :].sum(axis=1)                     # (S, HW)
    z_sums = basis_cm[:, 2 * N_CP:3 * N_CP, :].sum(axis=1)                 # (S, HW)
    eye_s = jnp.eye(S, dtype=jnp.float32)
    y_block = (eye_s[:, :, None] * y_sums[:, None, :]).reshape(S, S * HW)
    x_block = (eye_s[:, :, None] * z_sums[:, None, :]).reshape(S, S * HW)
    render_mat = jnp.concatenate([r_main, y_block, x_block], axis=0)       # (56, S*HW)

    return {
        'conv_wT': conv_wT,
        'pool_mat': pool_mat,
        'comb_w': comb_w,
        'comb_b': comb_b,
        'render_mat': render_mat,
    }


# ----------------------------- forward -----------------------------
def full_pp_model(fused, voxelized_mean_mesh, input_vol):
    patchesT = im2col_3x3_T(input_vol)                   # [C*9+1, B*HW]
    mean_flat = voxelized_mean_mesh.reshape(B, S * HW)   # free contiguous reshape

    out = pl.pallas_call(
        _full_pp_kernel,
        out_shape=jax.ShapeDtypeStruct((B, S * HW), jnp.float32),
        grid=(1,),
        in_specs=[
            pl.BlockSpec((K_CONV + 1, B * HW), lambda i: (0, 0)),   # patches (transposed)
            pl.BlockSpec((F, K_CONV + 1), lambda i: (0, 0)),        # conv weight^T + bias col
            pl.BlockSpec((B, B * HW), lambda i: (0, 0)),            # pool matrix
            pl.BlockSpec((F, N_COMB), lambda i: (0, 0)),            # fused head weights
            pl.BlockSpec((1, N_COMB), lambda i: (0, 0)),            # fused head bias
            pl.BlockSpec((K_REN, S * HW), lambda i: (0, 0)),        # fused render matrix
            pl.BlockSpec((B, S * HW), lambda i: (0, 0)),            # voxelized mean mesh
        ],
        out_specs=pl.BlockSpec((B, S * HW), lambda i: (0, 0)),
        compiler_params=pltpu.CompilerParams(dimension_semantics=("arbitrary",)),
    )(patchesT, fused['conv_wT'], fused['pool_mat'], fused['comb_w'],
      fused['comb_b'], fused['render_mat'], mean_flat)

    return out.reshape(B, S, H, W)


# ----------------------------- pure-JAX reference (un-fused params) -----------------------------
def full_pp_reference(params, voxelized_mean_mesh, input_vol):
    hi = lax.Precision.HIGHEST
    xp = jnp.pad(input_vol, ((0, 0), (0, 0), (1, 1), (1, 1)))
    cols = [xp[:, :, dy:dy + H, dx:dx + W] for dy in range(3) for dx in range(3)]
    patches = jnp.stack(cols, axis=2).transpose(0, 3, 4, 1, 2).reshape(B * HW, K_CONV)
    y = jnp.maximum(jnp.dot(patches, params['conv_w'], precision=hi) + params['conv_b'], 0.0)
    pooled = y.reshape(B, HW, F).mean(axis=1)                                  # (B, F)
    heads = jnp.dot(pooled, params['head_w'], precision=hi) + params['head_b']
    modes = heads[:, :N_MODES]
    gshift = heads[:, N_MODES:N_MODES + 3]
    x_sh = heads[:, N_MODES + 3:N_MODES + 3 + S]
    y_sh = heads[:, N_MODES + 3 + S:N_MODES + 3 + 2 * S]
    rot = heads[:, N_MODES + 3 + 2 * S:]
    cp = (jnp.dot(modes, params['pca_w'], precision=hi) + params['pca_b']).reshape(B, N_CP, 3)
    ax, ay, az = rot[:, 0], rot[:, 1], rot[:, 2]
    cx, sx = jnp.cos(ax), jnp.sin(ax)
    cy, sy = jnp.cos(ay), jnp.sin(ay)
    cz, sz = jnp.cos(az), jnp.sin(az)
    R = jnp.stack([
        jnp.stack([cz * cy, cz * sy * sx - sz * cx, sz * sx + cz * sy * cx], -1),
        jnp.stack([sz * cy, cz * cx + sz * sy * sx, sz * sy * cx - cz * sx], -1),
        jnp.stack([-sy, cy * sx, cy * cx], -1)], -2)                           # (B, 3, 3)
    warped = jnp.einsum('bij,bnj->bni', R, cp, precision=hi) + gshift[:, None, :]
    slice_shifts = jnp.stack([jnp.zeros_like(y_sh), y_sh, x_sh], axis=-1)      # (B, S, 3)
    v = (warped[:, None, :, :] + slice_shifts[:, :, None, :]).reshape(B, S, K_CP)
    imgs = jnp.einsum('bsk,skp->bsp', v, params['render_basis'], precision=hi)
    return imgs.reshape(B, S, H, W) + voxelized_mean_mesh


if __name__ == "__main__":
    key = jax.random.PRNGKey(0)
    k_mesh, k_vol = jax.random.split(key)
    voxelized_mean_mesh = jax.random.normal(k_mesh, (B, S, H, W), jnp.float32)
    input_vol = jax.random.normal(k_vol, (B, C, H, W), jnp.float32)

    params = init_params(jax.random.PRNGKey(42))
    fused = fuse_params(params)        # fold PCA decode + render/shift/bias layout prep once

    fwd = jax.jit(full_pp_model)
    predicted_slices = fwd(fused, voxelized_mean_mesh, input_vol)
    jax.block_until_ready(predicted_slices)

    assert predicted_slices.shape == (B, S, H, W)
    assert bool(jnp.all(jnp.isfinite(predicted_slices)))

    reference = full_pp_reference(params, voxelized_mean_mesh, input_vol)
    max_err = float(jnp.max(jnp.abs(predicted_slices - reference)))
    assert max_err < 5e-2, f"kernel/reference mismatch: max |diff| = {max_err}"

    print("KERNEL_OK")
</pallas_src>

<mosaic_0001>
module attributes {stable_mosaic.version = 11 : i64} {
  func.func @_full_pp_kernel(%arg0: i32, %arg1: memref<37x512xf32, #tpu.memory_space<vmem>>, %arg2: memref<8x37xf32, #tpu.memory_space<vmem>>, %arg3: memref<2x512xf32, #tpu.memory_space<vmem>>, %arg4: memref<8x62xf32, #tpu.memory_space<vmem>>, %arg5: memref<1x62xf32, #tpu.memory_space<vmem>>, %arg6: memref<56x1024xf32, #tpu.memory_space<vmem>>, %arg7: memref<2x1024xf32, #tpu.memory_space<vmem>>, %arg8: memref<2x1024xf32, #tpu.memory_space<vmem>>) attributes {dimension_semantics = [#tpu.dimension_semantics<arbitrary>], iteration_bounds = array<i64: 1>, scalar_prefetch = 0 : i64, scratch_operands = 0 : i64, tpu.core_type = #tpu.core_type<tc>, window_params = [{pipeline_mode = #tpu.pipeline_mode<synchronous>, transform_indices = @transform_0, window_bounds = array<i64: 37, 512>}, {pipeline_mode = #tpu.pipeline_mode<synchronous>, transform_indices = @transform_1, window_bounds = array<i64: 8, 37>}, {pipeline_mode = #tpu.pipeline_mode<synchronous>, transform_indices = @transform_2, window_bounds = array<i64: 2, 512>}, {pipeline_mode = #tpu.pipeline_mode<synchronous>, transform_indices = @transform_3, window_bounds = array<i64: 8, 62>}, {pipeline_mode = #tpu.pipeline_mode<synchronous>, transform_indices = @transform_4, window_bounds = array<i64: 1, 62>}, {pipeline_mode = #tpu.pipeline_mode<synchronous>, transform_indices = @transform_5, window_bounds = array<i64: 56, 1024>}, {pipeline_mode = #tpu.pipeline_mode<synchronous>, transform_indices = @transform_6, window_bounds = array<i64: 2, 1024>}, {pipeline_mode = #tpu.pipeline_mode<synchronous>, transform_indices = @transform_7, window_bounds = array<i64: 2, 1024>}]} {
    %c0 = arith.constant 0 : index
    %c0_0 = arith.constant 0 : index
    %0 = vector.load %arg2[%c0, %c0_0] : memref<8x37xf32, #tpu.memory_space<vmem>>, vector<8x37xf32>
    %c0_1 = arith.constant 0 : index
    %c0_2 = arith.constant 0 : index
    %1 = vector.load %arg1[%c0_1, %c0_2] : memref<37x512xf32, #tpu.memory_space<vmem>>, vector<37x512xf32>
    %cst = arith.constant dense<0.000000e+00> : vector<8x512xf32>
    %2 = tpu.matmul %0, %1, %cst {dimension_numbers = #tpu.dot_dimension_numbers<[1], [0], [0], [1], [0, 0, 1, 1], [], []>} : vector<8x37xf32>, vector<37x512xf32>, vector<8x512xf32> -> vector<8x512xf32>
    %cst_3 = arith.constant 0.000000e+00 : f32
    %3 = vector.broadcast %cst_3 : f32 to vector<8x512xf32>
    %4 = arith.maximumf %2, %3 : vector<8x512xf32>
    %c0_4 = arith.constant 0 : index
    %c0_5 = arith.constant 0 : index
    %5 = vector.load %arg3[%c0_4, %c0_5] : memref<2x512xf32, #tpu.memory_space<vmem>>, vector<2x512xf32>
    %cst_6 = arith.constant dense<0.000000e+00> : vector<2x8xf32>
    %6 = tpu.matmul %5, %4, %cst_6 {dimension_numbers = #tpu.dot_dimension_numbers<[1], [1], [0], [0], [0, 0, 1, 0], [], []>} : vector<2x512xf32>, vector<8x512xf32>, vector<2x8xf32> -> vector<2x8xf32>
    %c0_7 = arith.constant 0 : index
    %c0_8 = arith.constant 0 : index
    %7 = vector.load %arg4[%c0_7, %c0_8] : memref<8x62xf32, #tpu.memory_space<vmem>>, vector<8x62xf32>
    %cst_9 = arith.constant dense<0.000000e+00> : vector<2x62xf32>
    %8 = tpu.matmul %6, %7, %cst_9 {dimension_numbers = #tpu.dot_dimension_numbers<[1], [0], [0], [1], [0, 0, 1, 1], [], []>} : vector<2x8xf32>, vector<8x62xf32>, vector<2x62xf32> -> vector<2x62xf32>
    %c0_10 = arith.constant 0 : index
    %c0_11 = arith.constant 0 : index
    %9 = vector.load %arg5[%c0_10, %c0_11] : memref<1x62xf32, #tpu.memory_space<vmem>>, vector<1x62xf32>
    %10 = vector.broadcast %9 : vector<1x62xf32> to vector<2x62xf32>
    %11 = arith.addf %8, %10 : vector<2x62xf32>
    %12 = vector.extract_strided_slice %11 {offsets = [0, 0], sizes = [2, 3], strides = [1, 1]} : vector<2x62xf32> to vector<2x3xf32>
    %13 = vector.extract_strided_slice %11 {offsets = [0, 3], sizes = [2, 4], strides = [1, 1]} : vector<2x62xf32> to vector<2x4xf32>
    %14 = vector.extract_strided_slice %11 {offsets = [0, 7], sizes = [2, 4], strides = [1, 1]} : vector<2x62xf32> to vector<2x4xf32>
    %15 = vector.extract_strided_slice %11 {offsets = [0, 11], sizes = [2, 3], strides = [1, 1]} : vector<2x62xf32> to vector<2x3xf32>
    %16 = vector.extract_strided_slice %11 {offsets = [0, 14], sizes = [2, 48], strides = [1, 1]} : vector<2x62xf32> to vector<2x48xf32>
    %17 = vector.extract_strided_slice %15 {offsets = [0, 0], sizes = [2, 1], strides = [1, 1]} : vector<2x3xf32> to vector<2x1xf32>
    %18 = vector.extract_strided_slice %15 {offsets = [0, 1], sizes = [2, 1], strides = [1, 1]} : vector<2x3xf32> to vector<2x1xf32>
    %19 = vector.extract_strided_slice %15 {offsets = [0, 2], sizes = [2, 1], strides = [1, 1]} : vector<2x3xf32> to vector<2x1xf32>
    %20 = math.cos %17 : vector<2x1xf32>
    %21 = math.sin %17 : vector<2x1xf32>
    %22 = math.cos %18 : vector<2x1xf32>
    %23 = math.sin %18 : vector<2x1xf32>
    %24 = math.cos %19 : vector<2x1xf32>
    %25 = math.sin %19 : vector<2x1xf32>
    %26 = arith.mulf %24, %22 : vector<2x1xf32>
    %27 = arith.mulf %24, %23 : vector<2x1xf32>
    %28 = arith.mulf %27, %21 : vector<2x1xf32>
    %29 = arith.mulf %25, %20 : vector<2x1xf32>
    %30 = arith.subf %28, %29 : vector<2x1xf32>
    %31 = arith.mulf %25, %21 : vector<2x1xf32>
    %32 = arith.mulf %24, %23 : vector<2x1xf32>
    %33 = arith.mulf %32, %20 : vector<2x1xf32>
    %34 = arith.addf %31, %33 : vector<2x1xf32>
    %35 = arith.mulf %25, %22 : vector<2x1xf32>
    %36 = arith.mulf %24, %20 : vector<2x1xf32>
    %37 = arith.mulf %25, %23 : vector<2x1xf32>
    %38 = arith.mulf %37, %21 : vector<2x1xf32>
    %39 = arith.addf %36, %38 : vector<2x1xf32>
    %40 = arith.mulf %25, %23 : vector<2x1xf32>
    %41 = arith.mulf %40, %20 : vector<2x1xf32>
    %42 = arith.mulf %24, %21 : vector<2x1xf32>
    %43 = arith.subf %41, %42 : vector<2x1xf32>
    %cst_12 = arith.constant 0.000000e+00 : f32
    %44 = vector.broadcast %cst_12 : f32 to vector<2x1xf32>
    %45 = arith.subf %44, %23 : vector<2x1xf32>
    %46 = arith.mulf %22, %21 : vector<2x1xf32>
    %47 = arith.mulf %22, %20 : vector<2x1xf32>
    %48 = vector.extract_strided_slice %16 {offsets = [0, 0], sizes = [2, 16], strides = [1, 1]} : vector<2x48xf32> to vector<2x16xf32>
    %49 = vector.extract_strided_slice %16 {offsets = [0, 16], sizes = [2, 16], strides = [1, 1]} : vector<2x48xf32> to vector<2x16xf32>
    %50 = vector.extract_strided_slice %16 {offsets = [0, 32], sizes = [2, 16], strides = [1, 1]} : vector<2x48xf32> to vector<2x16xf32>
    %51 = vector.broadcast %26 : vector<2x1xf32> to vector<2x16xf32>
    %52 = arith.mulf %51, %48 : vector<2x16xf32>
    %53 = vector.broadcast %30 : vector<2x1xf32> to vector<2x16xf32>
    %54 = arith.mulf %53, %49 : vector<2x16xf32>
    %55 = arith.addf %52, %54 : vector<2x16xf32>
    %56 = vector.broadcast %34 : vector<2x1xf32> to vector<2x16xf32>
    %57 = arith.mulf %56, %50 : vector<2x16xf32>
    %58 = arith.addf %55, %57 : vector<2x16xf32>
    %59 = vector.extract_strided_slice %12 {offsets = [0, 0], sizes = [2, 1], strides = [1, 1]} : vector<2x3xf32> to vector<2x1xf32>
    %60 = vector.broadcast %59 : vector<2x1xf32> to vector<2x16xf32>
    %61 = arith.addf %58, %60 : vector<2x16xf32>
    %62 = vector.broadcast %35 : vector<2x1xf32> to vector<2x16xf32>
    %63 = arith.mulf %62, %48 : vector<2x16xf32>
    %64 = vector.broadcast %39 : vector<2x1xf32> to vector<2x16xf32>
    %65 = arith.mulf %64, %49 : vector<2x16xf32>
    %66 = arith.addf %63, %65 : vector<2x16xf32>
    %67 = vector.broadcast %43 : vector<2x1xf32> to vector<2x16xf32>
    %68 = arith.mulf %67, %50 : vector<2x16xf32>
    %69 = arith.addf %66, %68 : vector<2x16xf32>
    %70 = vector.extract_strided_slice %12 {offsets = [0, 1], sizes = [2, 1], strides = [1, 1]} : vector<2x3xf32> to vector<2x1xf32>
    %71 = vector.broadcast %70 : vector<2x1xf32> to vector<2x16xf32>
    %72 = arith.addf %69, %71 : vector<2x16xf32>
    %73 = vector.broadcast %45 : vector<2x1xf32> to vector<2x16xf32>
    %74 = arith.mulf %73, %48 : vector<2x16xf32>
    %75 = vector.broadcast %46 : vector<2x1xf32> to vector<2x16xf32>
    %76 = arith.mulf %75, %49 : vector<2x16xf32>
    %77 = arith.addf %74, %76 : vector<2x16xf32>
    %78 = vector.broadcast %47 : vector<2x1xf32> to vector<2x16xf32>
    %79 = arith.mulf %78, %50 : vector<2x16xf32>
    %80 = arith.addf %77, %79 : vector<2x16xf32>
    %81 = vector.extract_strided_slice %12 {offsets = [0, 2], sizes = [2, 1], strides = [1, 1]} : vector<2x3xf32> to vector<2x1xf32>
    %82 = vector.broadcast %81 : vector<2x1xf32> to vector<2x16xf32>
    %83 = arith.addf %80, %82 : vector<2x16xf32>
    %84 = tpu.concatenate %61, %72, %83, %14, %13 in 1 : vector<2x16xf32>, vector<2x16xf32>, vector<2x16xf32>, vector<2x4xf32>, vector<2x4xf32> -> vector<2x56xf32>
    %c0_13 = arith.constant 0 : index
    %c0_14 = arith.constant 0 : index
    %85 = vector.load %arg6[%c0_13, %c0_14] : memref<56x1024xf32, #tpu.memory_space<vmem>>, vector<56x1024xf32>
    %cst_15 = arith.constant dense<0.000000e+00> : vector<2x1024xf32>
    %86 = tpu.matmul %84, %85, %cst_15 {dimension_numbers = #tpu.dot_dimension_numbers<[1], [0], [0], [1], [0, 0, 1, 1], [], []>} : vector<2x56xf32>, vector<56x1024xf32>, vector<2x1024xf32> -> vector<2x1024xf32>
    %c0_16 = arith.constant 0 : index
    %c0_17 = arith.constant 0 : index
    %87 = vector.load %arg7[%c0_16, %c0_17] : memref<2x1024xf32, #tpu.memory_space<vmem>>, vector<2x1024xf32>
    %88 = arith.addf %86, %87 : vector<2x1024xf32>
    %c0_18 = arith.constant 0 : index
    %c0_19 = arith.constant 0 : index
    %89 = vector.load %arg8[%c0_18, %c0_19] : memref<2x1024xf32, #tpu.memory_space<vmem>>, vector<2x1024xf32>
    tpu.vector_store %arg8[%c0_18, %c0_19], %88 {strides = array<i32>} : memref<2x1024xf32, #tpu.memory_space<vmem>>, vector<2x1024xf32>,
    return
  }
  func.func @transform_0(%arg0: i32) -> (i32, i32) {
    %c0_i32 = arith.constant 0 : i32
    %c0_i32_0 = arith.constant 0 : i32
    %c0_i32_1 = arith.constant 0 : i32
    return %c0_i32, %c0_i32_0 : i32, i32
  }
  func.func @transform_1(%arg0: i32) -> (i32, i32) {
    %c0_i32 = arith.constant 0 : i32
    %c0_i32_0 = arith.constant 0 : i32
    %c0_i32_1 = arith.constant 0 : i32
    return %c0_i32, %c0_i32_0 : i32, i32
  }
  func.func @transform_2(%arg0: i32) -> (i32, i32) {
    %c0_i32 = arith.constant 0 : i32
    %c0_i32_0 = arith.constant 0 : i32
    %c0_i32_1 = arith.constant 0 : i32
    return %c0_i32, %c0_i32_0 : i32, i32
  }
  func.func @transform_3(%arg0: i32) -> (i32, i32) {
    %c0_i32 = arith.constant 0 : i32
    %c0_i32_0 = arith.constant 0 : i32
    %c0_i32_1 = arith.constant 0 : i32
    return %c0_i32, %c0_i32_0 : i32, i32
  }
  func.func @transform_4(%arg0: i32) -> (i32, i32) {
    %c0_i32 = arith.constant 0 : i32
    %c0_i32_0 = arith.constant 0 : i32
    %c0_i32_1 = arith.constant 0 : i32
    return %c0_i32, %c0_i32_0 : i32, i32
  }
  func.func @transform_5(%arg0: i32) -> (i32, i32) {
    %c0_i32 = arith.constant 0 : i32
    %c0_i32_0 = arith.constant 0 : i32
    %c0_i32_1 = arith.constant 0 : i32
    return %c0_i32, %c0_i32_0 : i32, i32
  }
  func.func @transform_6(%arg0: i32) -> (i32, i32) {
    %c0_i32 = arith.constant 0 : i32
    %c0_i32_0 = arith.constant 0 : i32
    %c0_i32_1 = arith.constant 0 : i32
    return %c0_i32, %c0_i32_0 : i32, i32
  }
  func.func @transform_7(%arg0: i32) -> (i32, i32) {
    %c0_i32 = arith.constant 0 : i32
    %c0_i32_0 = arith.constant 0 : i32
    %c0_i32_1 = arith.constant 0 : i32
    return %c0_i32, %c0_i32_0 : i32, i32
  }
}

</mosaic_0001>

<bundles_post_ra>
// kernel: full_pp_model.1
= control target key start
LH: loop header
LB: loop body
LE: loop exit
PB: predicated region body
PF: predicated region fallthrough
CT: control target
= control target key end

     0   :  { %v1392_v3 = vmov 0.0   ;;  %vm51_vm0 = vcmask 1044480   ;;  %vm47_vm1 = vcmask 302080   ;;  %v1393_v30 = vmov 1983009808   ;;  %s1404_s22 = smov 2   ;;  %s1777_s0 = inlined_call_operand.vmem [shape: f32[37,512], index: 0, kind: input, shape index: {}]   ;;  %s1778_s1 = inlined_call_operand.vmem [shape: f32[8,37], index: 1, kind: input, shape index: {}]   ;;  %s1779_s2 = inlined_call_operand.vmem [shape: f32[2,512], index: 2, kind: input, shape index: {}]   ;;  %s1780_s3 = inlined_call_operand.vmem [shape: f32[8,62], index: 3, kind: input, shape index: {}]   ;;  %s1781_s4 = inlined_call_operand.vmem [shape: f32[1,62], index: 4, kind: input, shape index: {}]   ;;  %s1782_s5 = inlined_call_operand.vmem [shape: f32[56,1024], index: 5, kind: input, shape index: {}]   ;;  %s1783_s6 = inlined_call_operand.vmem [shape: f32[2,1024], index: 6, kind: input, shape index: {}]   ;;  %s1784_s7 = inlined_call_operand.vmem [shape: f32[2,1024], index: 7, kind: output, shape index: {}]  }
   0x1   :  { %v28_v0 = vld [vmem:[%s1777_s0 + $0x8] sm:$0xff]  ;;  %v27_v2 = vld [vmem:[%s1777_s0] sm:$0xff]  ;;  %128 = vmatprep.mubr.f32.mxu0 %v1392_v3  ;;  %199 = vmatprep.mubr.f32.mxu1 %v1392_v3  ;;  %v30_v6 = vld [vmem:[%s1777_s0 + $0x18] sm:$0xff]  ;;  %v214_v31 = vunpack.c.l.s4 %v1393_v30  ;;  %v216_v32 = vlaneseq  ;;  %vm1394_vm2 = vmmov 0   ;;  %vm381_vm3 = vcmask 64512   ;;  %s1408_s23 = smov 112  }
   0x2   :  { %v32_v1 = vld [vmem:[%s1777_s0 + $0x28] sm:$0xff]  ;;  %v31_v5 = vld [vmem:[%s1777_s0 + $0x20] sm:$0xff]  ;;  %v34_v7 = vld [vmem:[%s1777_s0 + $0x38] sm:$0xff]  ;;  %s1409_s24 = smov 96   ;;  %s1410_s12 = smov 41  }
   0x3   :  { %v1285_v4 = vpack.c.bf16 %v32_v1, %v28_v0  ;;  %v1287_v8 = vpack.c.bf16 %v31_v5, %v27_v2  ;;  %v1293_v9 = vpack.c.bf16 %v34_v7, %v30_v6  ;;  %v36_v10 = vld [vmem:[%s1777_s0 + $0x48] sm:$0xff]  ;;  %v29_v12 = vld [vmem:[%s1777_s0 + $0x10] sm:$0xff]  ;;  %v35_v15 = vld [vmem:[%s1777_s0 + $0x40] sm:$0xff]  ;;  %v215_v33 = vunpack.c.0.s8 %v214_v31  ;;  %s1411_s13 = smov 18   ;;  %s1412_s14 = smov 114  }
   0x4   :  { %v40_v11 = vld [vmem:[%s1777_s0 + $0x68] sm:$0xff]  ;;  %v33_v14 = vld [vmem:[%s1777_s0 + $0x30] sm:$0xff]  ;;  %v39_v16 = vld [vmem:[%s1777_s0 + $0x60] sm:$0xff]  ;;  %v217_v34 = vshrl.u32 %v216_v32, 7  ;;  %v1396_v6 = vmov 2475754826  }
   0x5   :  { %1286 = vmatprep.subr.bf16.mxu0 %v1285_v4  ;;  %v1289_v13 = vpack.c.bf16 %v40_v11, %v36_v10  ;;  %1294 = vmatprep.subr.bf16.mxu1 %v1293_v9  ;;  %v1295_v17 = vpack.c.bf16 %v33_v14, %v29_v12  ;;  %v1291_v18 = vpack.c.bf16 %v39_v16, %v35_v15  ;;  %v38_v19 = vld [vmem:[%s1777_s0 + $0x58] sm:$0xff]  ;;  %v37_v22 = vld [vmem:[%s1777_s0 + $0x50] sm:$0xff]  ;;  %v44_v24 = vld [vmem:[%s1777_s0 + $0x88] sm:$0x1f]  ;;  %v1395_v4 = vmov 683565275  }
   0x6   :  { %1288 = vmatpush1.bf16.msra.mxu0 %v1287_v8  ;;  %v42_v20 = vld [vmem:[%s1777_s0 + $0x78] sm:$0xff]  ;;  %v41_v23 = vld [vmem:[%s1777_s0 + $0x70] sm:$0xff]  ;;  %v43_v27 = vld [vmem:[%s1777_s0 + $0x80] sm:$0x1f]  ;;  %v1520_v35 = vsub.s32 %v215_v33, %v217_v34  ;;  %v1397_v9 = vmov 2131351028  }
   0x7   :  { %1290 = vmatprep.subr.bf16.mxu0 %v1289_v13  ;;  %v1297_v21 = vpack.c.bf16 %v42_v20, %v38_v19  ;;  %1296 = vmatpush1.bf16.msra.mxu1 %v1295_v17  ;;  %v1299_v25 = vpack.c.bf16 %v41_v23, %v37_v22  ;;  %v46_v26 = vld [vmem:[%s1777_s0 + $0x98] sm:$0x1f]  ;;  %v26_v28 = vld [vmem:[%s1778_s1] sm:$0xff]  ;;  %v45_v29 = vld [vmem:[%s1777_s0 + $0x90] sm:$0x1f] }
   0x8   :  { %v210_v36 = vld [vmem:[%s1779_s2] sm:$0xff]  ;;  %v1398_v12 = vmov 2102212464   ;;  %v1399_v15 = vmov 920167782  }
   0x9   :  { %1298 = vmatprep.subr.bf16.mxu1 %v1297_v21  ;;  %v219_v37 = vrot.slane %v210_v36, %v1520_v35  ;;  %v373_v39 = vld [vmem:[%s1780_s3] sm:$0xff]  ;;  %v212_v40 = vcombine.high %v210_v36, %v210_v36 }
   0xa   :  { %1292 = vmatpush1.bf16.msra.mxu0 %v1291_v18  ;;  %v1264_v53 = vld [vmem:[%s1781_s4] ss:$0 sm:$0xff]  ;;  %v1400_v18 = vmov 1326507024   ;;  %s1403_s4 = smov 1  }
   0xb   :  { %1258 = vmatprep.subr.msk.mxu0 %vm51_vm0, %v44_v24  ;;  %1300 = vmatpush1.bf16.msra.mxu1 %v1299_v25  ;;  %v227_v38 = vcombine.high %v219_v37, %v219_v37  ;;  %v226_v43 = vrot.slane %v212_v40, %v1520_v35 }
   0xc   :  { %1261 = vmatprep.subr.msk.mxu1 %vm51_vm0, %v46_v26 }
   0xd   :  { %v228_v50 = vcombine.high %v226_v43, %v226_v43 }
   0xe   :  { %1259 = vmatpush1.msk.msra.mxu0 %vm51_vm0, %v43_v27 }
   0xf   :  { %1260 = vmatmul.mubr.msk.f32.vlgmr.msra.gmra.mrb[0].mxu0 %vm47_vm1, %v26_v28  ;;  %1262 = vmatpush1.msk.msra.mxu1 %vm51_vm0, %v45_v29 }
  0x10   :  { %1263 = vmatmul.mubr.msk.f32.vlgmr.msra.gmra.mrb[0].mxu1 %vm47_vm1, %v26_v28  ;;  %1280 = vmatprep.subr.mxu1 %v1392_v3 }
  0x11   :  { %297 = vmatprep.mubr.f32.mxu0 %v227_v38  ;;  %1281 = vmatpush3.msra.mxu1 %v373_v39 }
  0x12   :  { %1282 = vmatprep.mubr.msk.f32.mxu1 %vm1394_vm2, %v1392_v3 }
  0xe2   :  { %v130_v41 = vpop.f32.mrb[0].mxu0 }
  0xe3   :  { %v132_v42 = vpop.f32.mrb[1].mxu0  ;;  %v201_v45 = vpop.f32.mrb[0].mxu1  ;;  %v206_v46 = vmax.f32 %v130_v41, 0.0 }
  0xe4   :  { %v207_v44 = vmax.f32 %v132_v42, 0.0  ;;  %v203_v47 = vpop.f32.mrb[1].mxu1  ;;  %v208_v49 = vmax.f32 %v201_v45, 0.0 }
  0xe5   :  { %v209_v48 = vmax.f32 %v203_v47, 0.0 }
  0xe6   :  { %233 = vmatprep.subr.mxu0 %v207_v44 }
  0xe7   :  { %234 = vmatpush1.xpose.msra.mxu0 %v206_v46 }
  0xe8   :  { %303 = vmatprep.subr.mxu0 %v209_v48 }
  0xea   :  { %298 = vmatmul.mubr.f32.vlgmr.msra.gmra.mrb[2].mxu0 %v219_v37 }
  0xeb   :  { %304 = vmatpush1.xpose.msra.mxu0 %v208_v49  ;;  %367 = vmatprep.mubr.f32.mxu0 %v228_v50 }
  0xf2   :  { %368 = vmatmul.mubr.f32.vlgmr.msra.gmra.mrb[2].mxu0 %v226_v43 }
  0xf3   :  { %1059 = vmatprep.mubr.f32.mxu0 %v1392_v3 }
 0x1c5   :  { %v369_v51 = vpop.f32.mrb[2].mxu0 }
 0x1c6   :  { %v371_v52 = vpop.f32.mrb[3].mxu0  ;;  %1283 = vmatmul.mubr.msk.f32.vlgmr.msra.gmra.mrb[2].mxu1 %vm381_vm3, %v369_v51 }
 0x1c7   :  { %988 = vmatprep.mubr.f32.mxu1 %v1392_v3 }
 0x299   :  { %v451_v54 = vpop.f32.mrb[2].mxu1 }
 0x29a   :  { %v1536_v55 = vadd.f32 %v1264_v53, %v451_v54  ;;  %v1284_v56 = vpop.f32.mrb[3].mxu1 }
 0x29c   :  { %v458_v57 = vand.u32 2139095040, %v1536_v55  ;;  %v455_v61 = vand.u32 2147483647, %v1536_v55  ;;  %vm457_vm11 = vcmp.lt.s32.totalorder %v1536_v55, 0  ;;  %vm547_vm3 = vweird.f32 %v1536_v55 }
 0x29e   :  { %v459_v58 = vshrl.u32 %v458_v57, 23  ;;  %v462_v0 = vand.u32 8388607, %v455_v61  ;;  %vm456_vm12 = vcmp.le.f32.partialorder %v455_v61, 0.7853982 }
 0x2a0   :  { %v1266_v59 = vadd.s32 4294967169, %v459_v58  ;;  %v463_v20 = vor.u32 8388608, %v462_v0 }
 0x2a2   :  { %v465_v60 = vadd.s32 1, %v1266_v59  ;;  %v503_v34 = vshll.u32 %v463_v20, 8  ;;  %v1402_v20 = vmov 13  }
 0x2a3   :  { %1378 = vset.pattern.permute.xlu0 %v1402_v20 }
 0x2a4   :  { %vm466_vm4 = vcmp.gt.s32.totalorder %v465_v60, 0 }
 0x2a5   :  { %v467_v62 = vsel %vm466_vm4, %v465_v60, 0  ;;  %vm810_vm4 = vcmask 130048  }
 0x2a6   :  { %v469_v63 = vand.u32 31, %v467_v62  ;;  %v468_v2 = vshrl.u32 %v467_v62, 5 }
 0x2a8   :  { %v470_v1 = vsub.s32 32, %v469_v63  ;;  %v472_v5 = vshll.u32 %v1395_v4, %v469_v63  ;;  %v475_v7 = vshll.u32 %v1396_v6, %v469_v63  ;;  %v478_v11 = vshll.u32 %v1397_v9, %v469_v63 }
 0x2a9   :  { %v481_v14 = vshll.u32 %v1398_v12, %v469_v63  ;;  %v484_v17 = vshll.u32 %v1399_v15, %v469_v63  ;;  %vm487_vm5 = vcmp.lt.s32.totalorder %v468_v2, 1  ;;  %vm490_vm6 = vcmp.lt.s32.totalorder %v468_v2, 4 }
 0x2aa   :  { %v473_v8 = vshrl.u32 %v1396_v6, %v470_v1  ;;  %v476_v10 = vshrl.u32 %v1397_v9, %v470_v1  ;;  %v479_v13 = vshrl.u32 %v1398_v12, %v470_v1  ;;  %v482_v16 = vshrl.u32 %v1399_v15, %v470_v1 }
 0x2ab   :  { %v485_v19 = vshrl.u32 %v1400_v18, %v470_v1  ;;  %v471_v29 = vshrl.u32 %v1395_v4, %v470_v1  ;;  %vm489_vm7 = vcmp.lt.s32.totalorder %v468_v2, 3  ;;  %vm488_vm8 = vcmp.lt.s32.totalorder %v468_v2, 2 }
 0x2ac   :  { %v474_v21 = vor.u32 %v473_v8, %v472_v5  ;;  %v477_v22 = vor.u32 %v476_v10, %v475_v7  ;;  %v480_v23 = vor.u32 %v479_v13, %v478_v11  ;;  %v483_v24 = vor.u32 %v482_v16, %v481_v14 }
 0x2ad   :  { %v486_v25 = vor.u32 %v485_v19, %v484_v17  ;;  %v1401_v16 = vmov 12  }
 0x2ae   :  { %v492_v26 = vsel %vm490_vm6, %v480_v23, 2102212464  ;;  %v495_v27 = vsel %vm487_vm5, %v474_v21, %v477_v22  ;;  %v499_v28 = vsel %vm487_vm5, %v477_v22, %v480_v23  ;;  %v496_v30 = vsel %vm490_vm6, %v483_v24, 920167782  ;;  %1377 = vset.pattern.permute.xlu1 %v1401_v16 }
 0x2af   :  { %v500_v31 = vsel %vm490_vm6, %v486_v25, 1326507024  ;;  %v497_v32 = vsel %vm489_vm7, %v480_v23, %v496_v30  ;;  %v491_v36 = vsel %vm487_vm5, %v471_v29, %v474_v21  ;;  %v493_v37 = vsel %vm489_vm7, %v477_v22, %v492_v26 }
 0x2b0   :  { %v501_v33 = vsel %vm489_vm7, %v483_v24, %v500_v31  ;;  %v498_v38 = vsel %vm488_vm8, %v495_v27, %v497_v32  ;;  %v494_v44 = vsel %vm488_vm8, %v491_v36, %v493_v37  ;;  %vm812_vm5 = vcmask 261120  }
 0x2b1   :  { %v502_v39 = vsel %vm488_vm8, %v499_v28, %v501_v33  ;;  %v1545_v42 = vmul.u32.u64.low %v503_v34, %v498_v38  ;;  %v1546_v43 = vmul.u32.u64.high %v503_v34, %v498_v38, %v1545_v42  ;;  %v510_v46 = vmul.u32 %v503_v34, %v494_v44 }
 0x2b2   :  { %v1542_v40 = vmul.u32.u64.low %v503_v34, %v502_v39  ;;  %v1543_v41 = vmul.u32.u64.high %v503_v34, %v502_v39, %v1542_v40  ;;  %vm814_vm6 = vcmask 392192   ;;  %vm816_vm7 = vcmask 424960  }
 0x2b3   :  { %v513_v45 = vadd.s32 1, %v1546_v43  ;;  %vm920_vm8 = vcmask 457728  }
 0x2b4   :  { %vm512_vm9 = vc.u32 %v1543_v41, %v1545_v42  ;;  %v511_v59 = vadd.s32 %v1545_v42, %v1543_v41 }
 0x2b5   :  { %v514_v47 = vsel %vm512_vm9, %v513_v45, %v1546_v43 }
 0x2b6   :  { %v515_v48 = vadd.s32 %v514_v47, %v510_v46 }
 0x2b8   :  { %v516_v49 = vadd.s32 536870912, %v515_v48 }
 0x2ba   :  { %v517_v50 = vshrl.u32 %v516_v49, 30 }
 0x2bc   :  { %v518_v51 = vshll.u32 %v517_v50, 30  ;;  %v541_v9 = vsub.s32 4, %v517_v50 }
 0x2be   :  { %v519_v52 = vsub.s32 %v515_v48, %v518_v51  ;;  %v542_v12 = vsel %vm457_vm11, %v541_v9, %v517_v50  ;;  %v821_v9 = vld [vmem:[%s1782_s5 + $0x18] sm:$0xff] }
 0x2bf   :  { %v544_v14 = vsel %vm456_vm12, 0, %v542_v12 }
 0x2c0   :  { %v521_v53 = vsub.s32 0, %v519_v52  ;;  %v651_v15 = vadd.s32 3, %v544_v14  ;;  %v548_v18 = vand.u32 3, %v544_v14 }
 0x2c2   :  { %v1267_v54 = vmin.u32 %v521_v53, %v519_v52  ;;  %v652_v17 = vand.u32 3, %v651_v15  ;;  %vm553_vm14 = vcmp.eq.s32.totalorder %v548_v18, 2  ;;  %vm550_vm0 = vcmp.eq.s32.totalorder %v548_v18, 0 }
 0x2c3   :  { %vm549_vm2 = vcmp.lt.s32.totalorder %v548_v18, 2  ;;  %v1405_v53 = vmov 0   ;;  %v818_v18 = vld [vmem:[%s1782_s5] sm:$0xff] }
 0x2c4   :  { %v523_v56 = vclz %v1267_v54  ;;  %vm657_vm13 = vcmp.eq.s32.totalorder %v652_v17, 2  ;;  %vm654_vm15 = vcmp.eq.s32.totalorder %v652_v17, 0  ;;  %vm653_vm1 = vcmp.lt.s32.totalorder %v652_v17, 2 }
 0x2c5   :  { %v1406_v54 = vmov 1  }
 0x2c6   :  { %v1268_v57 = vadd.s32 4294967294, %v523_v56  ;;  %v1407_v56 = vmov 2  }
 0x2c8   :  { %vm1269_vm10 = vcmp.lt.s32.totalorder %v1268_v57, 0 }
 0x2c9   :  { %v526_v58 = vsel %vm1269_vm10, 0, %v1268_v57 }
 0x2ca   :  { %v527_v60 = vsub.s32 32, %v526_v58  ;;  %v531_v62 = vsub.s32 4294967266, %v526_v58  ;;  %v528_v63 = vshll.u32 %v519_v52, %v526_v58 }
 0x2cc   :  { %v529_v0 = vshrl.u32 %v511_v59, %v527_v60  ;;  %v532_v1 = vadd.s32 127, %v531_v62 }
 0x2ce   :  { %v530_v2 = vor.u32 %v529_v0, %v528_v63  ;;  %v533_v4 = vshll.u32 %v532_v1, 23 }
 0x2d0   :  { %v534_v5 = vor.u32 4788187, %v533_v4  ;;  %v537_v7 = vcvt.s32.f32 %v530_v2 }
 0x2d2   :  { %v535_v6 = vand.u32 2147483647, %v534_v5 }
 0x2d4   :  { %v538_v8 = vmul.f32 %v537_v7, %v535_v6  ;;  %v819_v7 = vld [vmem:[%s1782_s5 + $0x8] sm:$0xff] }
 0x2d6   :  { %v539_v10 = vxor.u32 2147483648, %v538_v8 }
 0x2d8   :  { %v540_v11 = vsel %vm457_vm11, %v539_v10, %v538_v8  ;;  %v827_v8 = vld [vmem:[%s1782_s5 + $0x48] sm:$0xff] }
 0x2d9   :  { %v543_v13 = vsel %vm456_vm12, %v1536_v55, %v540_v11  ;;  %v1301_v10 = vpack.c.bf16 %v827_v8, %v819_v7  ;;  %v829_v11 = vld [vmem:[%s1782_s5 + $0x58] sm:$0xff] }
 0x2da   :  { %1388 = vcosq.f32 %v543_v13  ;;  %v1313_v12 = vpack.c.bf16 %v829_v11, %v821_v9  ;;  %v825_v7 = vld [vmem:[%s1782_s5 + $0x38] sm:$0xff] }
 0x2db   :  { %1390 = vsinq.f32 %v543_v13  ;;  %1302 = vmatprep.subr.bf16.mxu1 %v1301_v10  ;;  %v833_v8 = vld [vmem:[%s1782_s5 + $0x78] sm:$0xff] }
 0x2dc   :  { %1314 = vmatprep.subr.bf16.mxu0 %v1313_v12  ;;  %v1337_v10 = vpack.c.bf16 %v833_v8, %v825_v7  ;;  %v875_v8 = vld [vmem:[%s1783_s6 + $0x8] sm:$0xff] }
 0x2e4   :  { %v1389_v19 = vpop.eup %1388 }
 0x2e5   :  { %v1391_v21 = vpop.eup %1390  ;;  %v554_v22 = vxor.u32 2147483648, %v1389_v19 }
 0x2e6   :  { %v551_v23 = vxor.u32 2147483648, %v1391_v21 }
 0x2e7   :  { %v659_v61 = vsel %vm657_vm13, %v554_v22, %v1391_v21  ;;  %v555_v24 = vsel %vm553_vm14, %v554_v22, %v1391_v21  ;;  %v828_v22 = vld [vmem:[%s1782_s5 + $0x50] sm:$0xff] }
 0x2e8   :  { %v656_v25 = vsel %vm654_vm15, %v1389_v19, %v551_v23  ;;  %v552_v26 = vsel %vm550_vm0, %v1389_v19, %v551_v23  ;;  %v826_v19 = vld [vmem:[%s1782_s5 + $0x40] sm:$0xff]  ;;  %v835_v23 = vld [vmem:[%s1782_s5 + $0x88] sm:$0xff] }
 0x2e9   :  { %v660_v27 = vsel %vm653_vm1, %v656_v25, %v659_v61  ;;  %v556_v28 = vsel %vm549_vm2, %v552_v26, %v555_v24  ;;  %v1303_v21 = vpack.c.bf16 %v826_v19, %v818_v18  ;;  %v843_v61 = vld [vmem:[%s1782_s5 + $0xc8] sm:$0xff] }
 0x2ea   :  { %v661_v29 = vsel %vm547_vm3, nan, %v660_v27  ;;  %v557_v30 = vsel %vm547_vm3, nan, %v556_v28  ;;  %v1305_v27 = vpack.c.bf16 %v843_v61, %v835_v23  ;;  %v837_v28 = vld [vmem:[%s1782_s5 + $0x98] sm:$0xff]  ;;  %v847_v61 = vld [vmem:[%s1782_s5 + $0xe8] sm:$0xff] }
 0x2eb   :  { %668 = vrot.lane.b32.xlu0 %v661_v29, %s1403_s4  ;;  %676 = vrot.lane.b32.xlu1 %v557_v30, %s1404_s22  ;;  %v692_v52 = vsub.f32 0.0, %v661_v29 }
 0x2ec   :  { %1304 = vmatpush1.bf16.msra.mxu1 %v1303_v21 }
 0x2ed   :  { %1306 = vmatprep.subr.bf16.mxu1 %v1305_v27 }
 0x2ef   :  { %672 = vrot.lane.b32.xlu0 %v661_v29, %s1404_s22  ;;  %663 = vrot.lane.b32.xlu1 %v557_v30, %s1403_s4 }
 0x35d   :  { %v669_v31 = vpop.permute.xlu0 %668  ;;  %v677_v33 = vpop.permute.xlu1 %676 }
 0x35e   :  { %v671_v32 = vmul.f32 %v669_v31, %v557_v30  ;;  %v686_v34 = vmul.f32 %v669_v31, %v661_v29  ;;  %v679_v37 = vmul.f32 %v677_v33, %v661_v29  ;;  %v685_v38 = vmul.f32 %v677_v33, %v557_v30  ;;  %v834_v31 = vld [vmem:[%s1782_s5 + $0x80] sm:$0xff] }
 0x360   :  { %768 = vperm.xlu1 %1377, %v671_v32   ;;  %v682_v45 = vmul.f32 %v677_v33, %v671_v32  ;;  %v689_v46 = vmul.f32 %v686_v34, %v677_v33  ;;  %v836_v33 = vld [vmem:[%s1782_s5 + $0x90] sm:$0xff] }
 0x361   :  { %v673_v36 = vpop.permute.xlu0 %672  ;;  %v664_v49 = vpop.permute.xlu1 %663 }
 0x362   :  { %v675_v39 = vmul.f32 %v673_v36, %v671_v32  ;;  %v687_v40 = vmul.f32 %v686_v34, %v673_v36  ;;  %v681_v41 = vmul.f32 %v673_v36, %v661_v29  ;;  %v690_v42 = vmul.f32 %v673_v36, %v557_v30  ;;  %v842_v32 = vld [vmem:[%s1782_s5 + $0xc0] sm:$0xff]  ;;  %v844_v36 = vld [vmem:[%s1782_s5 + $0xd0] sm:$0xff] }
 0x363   :  { %v666_v50 = vmul.f32 %v664_v49, %v557_v30  ;;  %v684_v51 = vmul.f32 %v664_v49, %v661_v29  ;;  %v845_v29 = vld [vmem:[%s1782_s5 + $0xd8] sm:$0xff]  ;;  %v1307_v34 = vpack.c.bf16 %v842_v32, %v834_v31  ;;  %v838_v31 = vld [vmem:[%s1782_s5 + $0xa0] sm:$0xff] }
 0x364   :  { %1379 = vset.pattern.permute.xlu1 %v1402_v20  ;;  %v688_v43 = vadd.f32 %v687_v40, %v685_v38  ;;  %v680_v44 = vsub.f32 %v675_v39, %v679_v37  ;;  %v691_v47 = vsub.f32 %v689_v46, %v690_v42  ;;  %v683_v48 = vadd.f32 %v682_v45, %v681_v41  ;;  %v820_v20 = vld [vmem:[%s1782_s5 + $0x10] sm:$0xff]  ;;  %v851_v40 = vld [vmem:[%s1782_s5 + $0x108] sm:$0xff]  ;;  %v853_v42 = vld [vmem:[%s1782_s5 + $0x118] sm:$0xff] }
 0x365   :  { %v1315_v26 = vpack.c.bf16 %v828_v22, %v820_v20  ;;  %v1317_v30 = vpack.c.bf16 %v845_v29, %v837_v28  ;;  %v1319_v39 = vpack.c.bf16 %v844_v36, %v836_v33  ;;  %v859_v41 = vld [vmem:[%s1782_s5 + $0x148] sm:$0xff]  ;;  %1308 = vmatpush1.bf16.msra.mxu1 %v1307_v34  ;;  %v861_v45 = vld [vmem:[%s1782_s5 + $0x158] sm:$0xff]  ;;  %v850_v46 = vld [vmem:[%s1782_s5 + $0x100] sm:$0xff] }
 0x366   :  { %735 = vperm.xlu1 %1379, %v688_v43   ;;  %701 = vperm.xlu0 %1378, %v680_v44   ;;  %v1309_v44 = vpack.c.bf16 %v859_v41, %v851_v40  ;;  %v830_v20 = vld [vmem:[%s1782_s5 + $0x60] sm:$0xff]  ;;  %v839_v22 = vld [vmem:[%s1782_s5 + $0xa8] sm:$0xff] }
 0x367   :  { %1316 = vmatpush1.bf16.msra.mxu0 %v1315_v26  ;;  %v846_v32 = vld [vmem:[%s1782_s5 + $0xe0] sm:$0xff]  ;;  %v1329_v34 = vpack.c.bf16 %v847_v61, %v839_v22  ;;  %v863_v41 = vld [vmem:[%s1782_s5 + $0x168] sm:$0xff] }
 0x368   :  { %1318 = vmatprep.subr.bf16.mxu0 %v1317_v30  ;;  %1310 = vmatprep.subr.bf16.mxu1 %v1309_v44  ;;  %v1331_v44 = vpack.c.bf16 %v846_v32, %v838_v31 }
 0x36a   :  { %746 = vperm.xlu1 %1379, %v691_v47   ;;  %712 = vperm.xlu0 %1378, %v683_v48   ;;  %v858_v47 = vld [vmem:[%s1782_s5 + $0x140] sm:$0xff]  ;;  %v1321_v48 = vpack.c.bf16 %v861_v45, %v853_v42  ;;  %v857_v42 = vld [vmem:[%s1782_s5 + $0x138] sm:$0xff] }
 0x36b   :  { %1320 = vmatpush1.bf16.msra.mxu0 %v1319_v39  ;;  %v1311_v49 = vpack.c.bf16 %v858_v47, %v850_v46  ;;  %v855_v39 = vld [vmem:[%s1782_s5 + $0x128] sm:$0xff]  ;;  %v854_v46 = vld [vmem:[%s1782_s5 + $0x120] sm:$0xff] }
 0x36c   :  { %1322 = vmatprep.subr.bf16.mxu0 %v1321_v48  ;;  %v1333_v47 = vpack.c.bf16 %v863_v41, %v855_v39 }
 0x36d   :  { %1312 = vmatpush1.bf16.msra.mxu1 %v1311_v49  ;;  %v862_v49 = vld [vmem:[%s1782_s5 + $0x160] sm:$0xff] }
 0x36e   :  { %695 = vperm.xlu1 %1379, %v666_v50   ;;  %1380 = vset.pattern.permute.xlu0 %v1401_v16 }
 0x36f   :  { %778 = vperm.xlu0 %1380, %v666_v50   ;;  %v852_v50 = vld [vmem:[%s1782_s5 + $0x110] sm:$0xff] }
 0x372   :  { %729 = vperm.xlu1 %1379, %v684_v51   ;;  %v860_v51 = vld [vmem:[%s1782_s5 + $0x150] sm:$0xff] }
 0x373   :  { %762 = vperm.xlu0 %1380, %v692_v52  }
 0x376   :  { %1381 = vset.pattern.permute.xlu1 %v1405_v53  ;;  %v1323_v53 = vpack.c.bf16 %v860_v51, %v852_v50  ;;  %v856_v50 = vld [vmem:[%s1782_s5 + $0x130] sm:$0xff] }
 0x377   :  { %723 = vperm.xlu1 %1381, %v1536_v55   ;;  %1382 = vset.pattern.permute.xlu0 %v1406_v54  ;;  %v864_v51 = vld [vmem:[%s1782_s5 + $0x170] sm:$0xff] }
 0x378   :  { %756 = vperm.xlu0 %1382, %v1536_v55   ;;  %1324 = vmatpush1.bf16.msra.mxu0 %v1323_v53  ;;  %v1347_v53 = vpack.c.bf16 %v864_v51, %v856_v50 }
 0x37b   :  { %1383 = vset.pattern.permute.xlu1 %v1407_v56 }
 0x37c   :  { %788 = vperm.xlu1 %1383, %v1536_v55   ;;  %1384 = vset.pattern.permute.xlu0 %v1407_v56 }
 0x3df   :  { %v769_v57 = vpop.permute.xlu1 %768 }
 0x3e0   :  { %v771_v58 = vmul.f32 %v769_v57, %v1536_v55 }
 0x3e2   :  { %773 = vrot.lane.b32.xlu1 %v771_v58, %s1408_s23 }
 0x3e5   :  { %v736_v59 = vpop.permute.xlu1 %735  ;;  %v702_v60 = vpop.permute.xlu0 %701 }
 0x3e6   :  { %v738_v62 = vmul.f32 %v736_v59, %v1536_v55  ;;  %v704_v63 = vmul.f32 %v702_v60, %v1536_v55  ;;  %v867_v59 = vld [vmem:[%s1782_s5 + $0x188] sm:$0xff]  ;;  %v869_v60 = vld [vmem:[%s1782_s5 + $0x198] sm:$0xff] }
 0x3e7   :  { %936 = vmatprep.subr.mxu1 %v867_v59  ;;  %1007 = vmatprep.subr.mxu0 %v869_v60 }
 0x3e8   :  { %740 = vrot.lane.b32.xlu0 %v738_v62, %s1408_s23  ;;  %706 = vrot.lane.b32.xlu1 %v704_v63, %s1408_s23  ;;  %v866_v62 = vld [vmem:[%s1782_s5 + $0x180] sm:$0xff] }
 0x3e9   :  { %v747_v0 = vpop.permute.xlu1 %746  ;;  %v713_v1 = vpop.permute.xlu0 %712  ;;  %937 = vmatpush1.msra.mxu1 %v866_v62 }
 0x3ea   :  { %v749_v2 = vmul.f32 %v747_v0, %v1536_v55  ;;  %v715_v4 = vmul.f32 %v713_v1, %v1536_v55  ;;  %v868_v0 = vld [vmem:[%s1782_s5 + $0x190] sm:$0xff]  ;;  %v823_v1 = vld [vmem:[%s1782_s5 + $0x28] sm:$0xff] }
 0x3eb   :  { %1008 = vmatpush1.msra.mxu0 %v868_v0 }
 0x3ec   :  { %751 = vrot.lane.b32.xlu1 %v749_v2, %s1409_s24  ;;  %717 = vrot.lane.b32.xlu0 %v715_v4, %s1409_s24  ;;  %v831_v2 = vld [vmem:[%s1782_s5 + $0x68] sm:$0xff] }
 0x3ed   :  { %v1580_v13 = vpop.permute.xlu1 %695  ;;  %1338 = vmatprep.subr.bf16.mxu0 %v1337_v10 }
 0x3ee   :  { %v779_v5 = vpop.permute.xlu0 %778  ;;  %v698_v4 = vmul.f32 %v1580_v13, %v1536_v55 }
 0x3ef   :  { %v781_v6 = vmul.f32 %v779_v5, %v1536_v55 }
 0x3f1   :  { %783 = vrot.lane.b32.xlu0 %v781_v6, %s1409_s24  ;;  %v730_v14 = vpop.permute.xlu1 %729  ;;  %v1325_v6 = vpack.c.bf16 %v831_v2, %v823_v1 }
 0x3f2   :  { %v763_v16 = vpop.permute.xlu0 %762  ;;  %v732_v43 = vmul.f32 %v730_v14, %v1536_v55 }
 0x3f3   :  { %v765_v58 = vmul.f32 %v763_v16, %v1536_v55  ;;  %1326 = vmatprep.subr.bf16.mxu1 %v1325_v6 }
 0x3f6   :  { %v1582_v15 = vpop.permute.xlu1 %723 }
 0x3f7   :  { %v757_v24 = vpop.permute.xlu0 %756 }
 0x3fb   :  { %v1584_v17 = vpop.permute.xlu1 %788 }
 0x454   :  { %v774_v25 = vpop.permute.xlu1 %773 }
 0x455   :  { %v776_v5 = vadd.f32 %v774_v25, %v765_v58  ;;  %v849_v25 = vld [vmem:[%s1782_s5 + $0xf8] sm:$0xff]  ;;  %v874_v58 = vld [vmem:[%s1783_s6] sm:$0xff] }
 0x456   :  { %v878_v59 = vcombine.high %v874_v58, %v874_v58  ;;  %v885_v60 = vrot.slane %v874_v58, %v1520_v35 }
 0x458   :  { %v892_v62 = vrot.slane %v878_v59, %v1520_v35 }
 0x45a   :  { %v707_v37 = vpop.permute.xlu1 %706  ;;  %v741_v38 = vpop.permute.xlu0 %740  ;;  %v894_v0 = vcombine.high %v892_v62, %v892_v62 }
 0x45b   :  { %v743_v52 = vadd.f32 %v741_v38, %v732_v43  ;;  %v709_v11 = vadd.f32 %v707_v37, %v698_v4  ;;  %v840_v37 = vld [vmem:[%s1782_s5 + $0xb0] sm:$0xff]  ;;  %v865_v43 = vld [vmem:[%s1782_s5 + $0x178] sm:$0xff] }
 0x45c   :  { %v848_v38 = vld [vmem:[%s1782_s5 + $0xf0] sm:$0xff]  ;;  %v1345_v48 = vpack.c.bf16 %v865_v43, %v857_v42 }
 0x45d   :  { %v1343_v45 = vpack.c.bf16 %v848_v38, %v840_v37 }
 0x45e   :  { %v752_v54 = vpop.permute.xlu1 %751  ;;  %v718_v56 = vpop.permute.xlu0 %717 }
 0x45f   :  { %v754_v57 = vadd.f32 %v752_v54, %v743_v52  ;;  %v720_v13 = vadd.f32 %v718_v56, %v709_v11  ;;  %v1335_v52 = vpack.c.bf16 %v862_v49, %v854_v46  ;;  %v871_v54 = vld [vmem:[%s1782_s5 + $0x1a8] sm:$0xff]  ;;  %v873_v56 = vld [vmem:[%s1782_s5 + $0x1b8] sm:$0xff] }
 0x461   :  { %v759_v63 = vadd.f32 %v757_v24, %v754_v57  ;;  %v726_v16 = vadd.f32 %v1582_v15, %v720_v13  ;;  %v824_v15 = vld [vmem:[%s1782_s5 + $0x30] sm:$0xff]  ;;  %v841_v24 = vld [vmem:[%s1782_s5 + $0xb8] sm:$0xff]  ;;  %v895_v13 = vcombine.high %v875_v8, %v875_v8 }
 0x462   :  { %v1341_v36 = vpack.c.bf16 %v849_v25, %v841_v24  ;;  %v872_v57 = vld [vmem:[%s1782_s5 + $0x1b0] sm:$0xff] }
 0x463   :  { %797 = vrot.lane.b32.xlu0 %v759_v63, %s1404_s22  ;;  %v784_v9 = vpop.permute.xlu0 %783  ;;  %s1413_s22 = smov 49   ;;  %v893_v63 = vcombine.high %v885_v60, %v885_v60 }
 0x464   :  { %v786_v12 = vadd.f32 %v784_v9, %v776_v5 }
 0x466   :  { %v791_v14 = vadd.f32 %v1584_v17, %v786_v12  ;;  %v822_v17 = vld [vmem:[%s1782_s5 + $0x20] sm:$0xff] }
 0x467   :  { %804 = vrot.lane.b32.xlu0 %v1536_v55, %s1410_s12  ;;  %v1327_v29 = vpack.c.bf16 %v830_v20, %v822_v17  ;;  %v909_v17 = vrot.slane %v895_v13, %v1520_v35 }
 0x468   :  { %801 = vrot.lane.b32.xlu1 %v791_v14, %s1411_s13 }
 0x46c   :  { %793 = vrot.lane.b32.xlu1 %v726_v16, %s1412_s14 }
 0x470   :  { %807 = vrot.lane.b32.xlu1 %v1536_v55, %s1413_s22  ;;  %v832_v55 = vld [vmem:[%s1782_s5 + $0x70] sm:$0xff] }
 0x471   :  { %v1339_v30 = vpack.c.bf16 %v832_v55, %v824_v15 }
 0x4d5   :  { %v798_v18 = vpop.permute.xlu0 %797 }
 0x4d9   :  { %v805_v26 = vpop.permute.xlu0 %804 }
 0x4da   :  { %v802_v19 = vpop.permute.xlu1 %801 }
 0x4de   :  { %v794_v21 = vpop.permute.xlu1 %793 }
 0x4df   :  { %v811_v23 = vsel %vm810_vm4, %v794_v21, %v798_v18  ;;  %v911_v21 = vcombine.high %v909_v17, %v909_v17 }
 0x4e0   :  { %v813_v27 = vsel %vm812_vm5, %v811_v23, %v802_v19  ;;  %v902_v19 = vrot.slane %v875_v8, %v1520_v35 }
 0x4e1   :  { %v815_v28 = vsel %vm814_vm6, %v813_v27, %v805_v26 }
 0x4e2   :  { %v808_v33 = vpop.permute.xlu1 %807  ;;  %v910_v20 = vcombine.high %v902_v19, %v902_v19 }
 0x4e3   :  { %v817_v40 = vsel %vm816_vm7, %v815_v28, %v808_v33 }
 0x4e4   :  { %1274 = vmatmul.mubr.msk.f32.vlgmr.msra.gmra.mrb[4].mxu1 %vm920_vm8, %v817_v40  ;;  %1275 = vmatmul.mubr.msk.f32.vlgmr.msra.gmra.mrb[4].mxu0 %vm920_vm8, %v817_v40 }
 0x4e5   :  { %1328 = vmatpush1.bf16.msra.mxu1 %v1327_v29  ;;  %1340 = vmatpush1.bf16.msra.mxu0 %v1339_v30 }
 0x4e6   :  { %1330 = vmatprep.subr.bf16.mxu1 %v1329_v34  ;;  %1342 = vmatprep.subr.bf16.mxu0 %v1341_v36 }
 0x4e7   :  { %1130 = vmatprep.mubr.f32.mxu1 %v1392_v3  ;;  %1201 = vmatprep.mubr.f32.mxu0 %v1392_v3  ;;  %v870_v3 = vld [vmem:[%s1782_s5 + $0x1a0] sm:$0xff] }
 0x4e9   :  { %1332 = vmatpush1.bf16.msra.mxu1 %v1331_v44  ;;  %1344 = vmatpush1.bf16.msra.mxu0 %v1343_v45 }
 0x4ea   :  { %1334 = vmatprep.subr.bf16.mxu1 %v1333_v47  ;;  %1346 = vmatprep.subr.bf16.mxu0 %v1345_v48 }
 0x4ed   :  { %1336 = vmatpush1.bf16.msra.mxu1 %v1335_v52  ;;  %1348 = vmatpush1.bf16.msra.mxu0 %v1347_v53 }
 0x4ee   :  { %1078 = vmatprep.subr.mxu1 %v871_v54  ;;  %1149 = vmatprep.subr.mxu0 %v873_v56 }
 0x4f1   :  { %1079 = vmatpush1.msra.mxu1 %v870_v3  ;;  %1150 = vmatpush1.msra.mxu0 %v872_v57 }
 0x4f2   :  { %1276 = vmatmul.mubr.msk.f32.vlgmr.msra.gmra.mrb[6].mxu1 %vm920_vm8, %v817_v40  ;;  %1277 = vmatmul.mubr.msk.f32.vlgmr.msra.gmra.mrb[6].mxu0 %vm920_vm8, %v817_v40 }
 0x5b7   :  { %v990_v1 = vpop.f32.mrb[4].mxu1  ;;  %v1061_v2 = vpop.f32.mrb[4].mxu0 }
 0x5b8   :  { %v991_v4 = vadd.f32 %v990_v1, %v885_v60  ;;  %v1062_v5 = vadd.f32 %v1061_v2, %v892_v62  ;;  %v992_v6 = vpop.f32.mrb[5].mxu1  ;;  %v1063_v7 = vpop.f32.mrb[5].mxu0 }
 0x5b9   :  { %v993_v9 = vadd.f32 %v992_v6, %v893_v63  ;;  %v1064_v10 = vadd.f32 %v1063_v7, %v894_v0 }
 0x5bb   :  { %v1216_v11 = vcombine.low %v991_v4, %v993_v9  ;;  %v1217_v12 = vcombine.low %v1062_v5, %v1064_v10 }
 0x5bd   :  { %v1224_v14 = vrot.slane %v1216_v11, %v1520_v35  ;;  %v1231_v16 = vrot.slane %v1217_v12, %v1520_v35 }
 0x5bf   :  { %v1232_v18 = vcombine.low %v1224_v14, %v1231_v16 }
 0x5c1   :  { %1252 = vst [vmem:[%s1784_s7] sm:$0xff] %v1232_v18 }
 0x5c5   :  { %v1132_v15 = vpop.f32.mrb[6].mxu1  ;;  %v1203_v55 = vpop.f32.mrb[6].mxu0 }
 0x5c6   :  { %v1133_v22 = vadd.f32 %v1132_v15, %v902_v19  ;;  %v1204_v23 = vadd.f32 %v1203_v55, %v909_v17  ;;  %v1134_v61 = vpop.f32.mrb[7].mxu1  ;;  %v1205_v24 = vpop.f32.mrb[7].mxu0 }
 0x5c7   :  { %v1135_v25 = vadd.f32 %v1134_v61, %v910_v20  ;;  %v1206_v26 = vadd.f32 %v1205_v24, %v911_v21 }
 0x5c9   :  { %v1233_v27 = vcombine.low %v1133_v22, %v1135_v25  ;;  %v1234_v28 = vcombine.low %v1204_v23, %v1206_v26 }
 0x5cb   :  { %v1241_v29 = vrot.slane %v1233_v27, %v1520_v35  ;;  %v1248_v30 = vrot.slane %v1234_v28, %v1520_v35 }
 0x5cd   :  { %v1249_v31 = vcombine.low %v1241_v29, %v1248_v30 }
 0x5cf   :  { %1253 = vst [vmem:[%s1784_s7 + $0x8] sm:$0xff] %v1249_v31 }

</bundles_post_ra>
